<compile_context>
chip_gen: v7x
topology: tpu7x:2x2x1
jax: 0.10.0
libtpu: 0.0.40
codegen_flags: <defaults>
</compile_context>

<pallas_src>
import jax
import jax.numpy as jnp
from jax.experimental import pallas as pl
from jax.experimental.pallas import tpu as pltpu


# ---------------------------------------------------------------------------
# Pallas kernel: fused 3x3 SAME conv == one GEMM on a stacked, lane-shifted block.
# ---------------------------------------------------------------------------
def _make_conv3x3_kernel(B, Cin, Cout, H, W, KPAD, compute_dtype):
    HW = H * W
    BHW = B * HW
    K = 9 * Cin          # real contraction depth (27 for Cin=3)

    def kernel(x_ref, w_ref, b_ref, o_ref, xs_ref):
        # x_ref : (B, Cin, L)   L = (H+2)*W + 2 (vertical zero pad + 1-elem flat pad)
        # w_ref : (Cout, KPAD)  column = (kh*3 + kw)*Cin + cin, zero-padded to KPAD
        # b_ref : (Cout, 1)     bias (f32)
        # o_ref : (B, Cout, HW) lane-dense output (HW is a multiple of 128)
        # xs_ref: (KPAD, B*HW)  f32 VMEM scratch: stacked masked lane-shifted taps
        col = jax.lax.broadcasted_iota(jnp.int32, (1, HW), 1) % W
        not_first = col != 0          # mask for kw == 0 taps (left wrap-around)
        not_last = col != (W - 1)     # mask for kw == 2 taps (right wrap-around)

        # Zero the K-padding tail once.  The matching weight columns are zero, but
        # stale VMEM could hold NaNs and 0 * NaN = NaN.  Aligned 8-row slab; the
        # rows < K inside it are overwritten by the fill loop below.
        if KPAD > K:
            zstart = (K // 8) * 8
            xs_ref[pl.ds(zstart, KPAD - zstart), :] = jnp.zeros(
                (KPAD - zstart, BHW), xs_ref.dtype)

        # Build the stacked activation: nine static lane-offset slices of the one
        # resident padded block, stacked along sublanes; batch folded into lanes
        # (both slabs start at lane offsets that are multiples of 128).
        for t in range(9):
            kh, kw = divmod(t, 3)
            off = kh * W + kw                       # static lane offset
            for b in range(B):                      # tiny static batch unroll
                xs = x_ref[b, :, pl.ds(off, HW)]    # (Cin, HW)
                if kw == 0:
                    xs = jnp.where(not_first, xs, 0.0)
                elif kw == 2:
                    xs = jnp.where(not_last, xs, 0.0)
                xs_ref[pl.ds(t * Cin, Cin), pl.ds(b * HW, HW)] = xs.astype(
                    xs_ref.dtype)

        # ONE fused GEMM for all taps and both batch elements:
        #   (Cout, KPAD) x (KPAD, B*HW) with f32 accumulation on the MXU.
        acc = jnp.dot(w_ref[...],
                      xs_ref[...].astype(compute_dtype),
                      preferred_element_type=jnp.float32)
        acc = acc + b_ref[...]                      # (Cout,1) broadcasts over lanes

        for b in range(B):                          # lane-dense stores at k*128
            o_ref[b] = acc[:, b * HW:(b + 1) * HW].astype(o_ref.dtype)

    return kernel


def prep_conv3x3_weights(weight, bias, kpad=32, compute_dtype=jnp.float32):
    """One-time weight layout transform (kept OUT of the per-call path).

    weight: (Cout, Cin, 3, 3), bias: (Cout,)
    returns w_mat: (Cout, kpad) in compute_dtype, b_col: (Cout, 1) f32.
    """
    Cout, Cin, KH, KW = weight.shape
    assert (KH, KW) == (3, 3)
    k = KH * KW * Cin
    assert kpad >= k
    # (Cout, Cin, 3, 3) -> (Cout, 3, 3, Cin) -> (Cout, 9*Cin); col = tap*Cin + cin.
    w_mat = jnp.transpose(weight, (0, 2, 3, 1)).reshape(Cout, k)
    w_mat = jnp.pad(w_mat, ((0, 0), (0, kpad - k))).astype(compute_dtype)
    b_col = bias.reshape(Cout, 1).astype(jnp.float32)
    return w_mat, b_col


def conv2d_3x3_same_pallas(x_nchw, w_mat, b_col):
    """Conv2d(kernel_size=3, stride=1, padding=1), PyTorch semantics.

    x_nchw: (B, Cin, H, W); w_mat/b_col from prep_conv3x3_weights.
    The MXU operand dtype follows w_mat.dtype (f32 or bf16); accumulation is f32.
    returns: (B, Cout, H, W) in x_nchw.dtype.
    """
    B, Cin, H, W = x_nchw.shape
    Cout, KPAD = w_mat.shape
    HW = H * W
    L = (H + 2) * W + 2
    compute_dtype = w_mat.dtype

    # ---- glue: cheap layout plumbing (fused under jit; no im2col blow-up) ----
    x = x_nchw.astype(compute_dtype)
    x_vp = jnp.pad(x, ((0, 0), (0, 0), (1, 1), (0, 0)))            # (B, Cin, H+2, W)
    x_flat = jnp.pad(x_vp.reshape(B, Cin, (H + 2) * W),
                     ((0, 0), (0, 0), (1, 1)))                      # (B, Cin, L)

    kernel = _make_conv3x3_kernel(B, Cin, Cout, H, W, KPAD, compute_dtype)

    out_flat = pl.pallas_call(
        kernel,
        out_shape=jax.ShapeDtypeStruct((B, Cout, HW), x_nchw.dtype),
        grid=(1,),                    # whole problem is one resident VMEM block
        in_specs=[
            pl.BlockSpec((B, Cin, L), lambda i: (0, 0, 0)),
            pl.BlockSpec((Cout, KPAD), lambda i: (0, 0)),
            pl.BlockSpec((Cout, 1), lambda i: (0, 0)),
        ],
        out_specs=pl.BlockSpec((B, Cout, HW), lambda i: (0, 0, 0)),
        scratch_shapes=[pltpu.VMEM((KPAD, B * HW), jnp.float32)],
        compiler_params=pltpu.CompilerParams(
            dimension_semantics=("arbitrary",)),
    )(x_flat, w_mat, b_col)

    return out_flat.reshape(B, Cout, H, W)   # already NCHW; no final transpose


# ---------------------------------------------------------------------------
# Deterministic parameter init (shapes from Encoder.__init__) + weight prep.
# ---------------------------------------------------------------------------
def init_encoder_params(key, compute_dtype=jnp.float32):
    k0w, k0b, k1w, k1b = jax.random.split(key, 4)
    # PyTorch Conv2d default init: U(-1/sqrt(fan_in), 1/sqrt(fan_in))
    fan_in0 = 3 * 3 * 3
    bound0 = 1.0 / float(jnp.sqrt(fan_in0))
    c0_w = jax.random.uniform(k0w, (25, 3, 3, 3), jnp.float32, -bound0, bound0)
    c0_b = jax.random.uniform(k0b, (25,), jnp.float32, -bound0, bound0)
    fan_in1 = 25 * 3 * 3
    bound1 = 1.0 / float(jnp.sqrt(fan_in1))
    c1_w = jax.random.uniform(k1w, (80, 25, 3, 3), jnp.float32, -bound1, bound1)  # unused in forward
    c1_b = jax.random.uniform(k1b, (80,), jnp.float32, -bound1, bound1)           # unused in forward

    # Precompute the kernel-friendly weight layout once (not per forward call).
    c0_w_mat, c0_b_col = prep_conv3x3_weights(c0_w, c0_b, kpad=32,
                                              compute_dtype=compute_dtype)
    return dict(c0_w=c0_w, c0_b=c0_b, c0_w_mat=c0_w_mat, c0_b_col=c0_b_col,
                c1_w=c1_w, c1_b=c1_b)


@jax.jit
def encoder_forward(params, frameseq):
    latent = conv2d_3x3_same_pallas(frameseq, params["c0_w_mat"], params["c0_b_col"])
    # TODO(synk): self.enc (torchaudio Conformer) skipped — see header comment.
    return latent


if __name__ == "__main__":
    key = jax.random.PRNGKey(0)
    pkey, xkey = jax.random.split(key)

    B, C, H, W = 2, 3, 16, 16
    frameseq = jax.random.normal(xkey, (B, C, H, W), dtype=jnp.float32)

    # XLA conv reference (f32).
    params = init_encoder_params(pkey, compute_dtype=jnp.float32)
    ref = jax.lax.conv_general_dilated(
        frameseq, params["c0_w"], window_strides=(1, 1), padding="SAME",
        dimension_numbers=("NCHW", "OIHW", "NCHW"),
    ) + params["c0_b"][None, :, None, None]

    # f32 path: strict check.
    out = encoder_forward(params, frameseq)
    out = jax.block_until_ready(out)
    assert out.shape == (B, 25, H, W), out.shape
    err = float(jnp.max(jnp.abs(out - ref)))
    if err > 1e-4:
        raise AssertionError(f"Pallas conv (f32) mismatch: max abs err {err}")

    # bf16 MXU-operand path (v6e/v7x recommendation): f32 accumulate, looser check.
    params_bf16 = dict(params)
    params_bf16["c0_w_mat"], params_bf16["c0_b_col"] = prep_conv3x3_weights(
        params["c0_w"], params["c0_b"], kpad=32, compute_dtype=jnp.bfloat16)
    out_bf16 = encoder_forward(params_bf16, frameseq)
    out_bf16 = jax.block_until_ready(out_bf16)
    err_bf16 = float(jnp.max(jnp.abs(out_bf16 - ref)))
    if err_bf16 > 5e-2:
        raise AssertionError(f"Pallas conv (bf16) mismatch: max abs err {err_bf16}")

    print("KERNEL_OK")
</pallas_src>

<mosaic_0001>
module attributes {stable_mosaic.version = 11 : i64} {
  func.func @kernel(%arg0: i32, %arg1: memref<2x3x290xf32, #tpu.memory_space<vmem>>, %arg2: memref<25x32xf32, #tpu.memory_space<vmem>>, %arg3: memref<25x1xf32, #tpu.memory_space<vmem>>, %arg4: memref<2x25x256xf32, #tpu.memory_space<vmem>>, %arg5: memref<32x512xf32, #tpu.memory_space<vmem>>) attributes {dimension_semantics = [#tpu.dimension_semantics<arbitrary>], iteration_bounds = array<i64: 1>, scalar_prefetch = 0 : i64, scratch_operands = 1 : i64, tpu.core_type = #tpu.core_type<tc>, window_params = [{pipeline_mode = #tpu.pipeline_mode<synchronous>, transform_indices = @transform_0, window_bounds = array<i64: 2, 3, 290>}, {pipeline_mode = #tpu.pipeline_mode<synchronous>, transform_indices = @transform_1, window_bounds = array<i64: 25, 32>}, {pipeline_mode = #tpu.pipeline_mode<synchronous>, transform_indices = @transform_2, window_bounds = array<i64: 25, 1>}, {pipeline_mode = #tpu.pipeline_mode<synchronous>, transform_indices = @transform_3, window_bounds = array<i64: 2, 25, 256>}]} {
    %0 = tpu.iota {dimensions = array<i32: 1>} : vector<1x256xi32>
    %c16_i32 = arith.constant 16 : i32
    %c0_i32 = arith.constant 0 : i32
    %1 = arith.cmpi eq, %c16_i32, %c0_i32 : i32
    %c1_i32 = arith.constant 1 : i32
    %2 = arith.select %1, %c1_i32, %c16_i32 : i32
    %3 = vector.broadcast %2 : i32 to vector<1x256xi32>
    %4 = arith.remsi %0, %3 : vector<1x256xi32>
    %c0_i32_0 = arith.constant 0 : i32
    %5 = vector.broadcast %c0_i32_0 : i32 to vector<1x256xi32>
    %6 = arith.cmpi ne, %4, %5 : vector<1x256xi32>
    %c0_i32_1 = arith.constant 0 : i32
    %7 = vector.broadcast %c0_i32_1 : i32 to vector<1x256xi32>
    %8 = arith.cmpi slt, %4, %7 : vector<1x256xi32>
    %c0_i32_2 = arith.constant 0 : i32
    %9 = arith.cmpi slt, %2, %c0_i32_2 : i32
    %10 = vector.broadcast %9 : i1 to vector<1x256xi1>
    %11 = vector.broadcast %10 : vector<1x256xi1> to vector<1x256xi1>
    %12 = arith.xori %8, %11 : vector<1x256xi1>
    %13 = arith.andi %12, %6 : vector<1x256xi1>
    %14 = vector.broadcast %2 : i32 to vector<1x256xi32>
    %15 = arith.addi %4, %14 : vector<1x256xi32>
    %16 = arith.select %13, %15, %4 : vector<1x256xi1>, vector<1x256xi32>
    %c0_i32_3 = arith.constant 0 : i32
    %17 = vector.broadcast %c0_i32_3 : i32 to vector<1x256xi32>
    %18 = arith.cmpi ne, %16, %17 : vector<1x256xi32>
    %c15_i32 = arith.constant 15 : i32
    %19 = vector.broadcast %c15_i32 : i32 to vector<1x256xi32>
    %20 = arith.cmpi ne, %16, %19 : vector<1x256xi32>
    %cst = arith.constant 0.000000e+00 : f32
    %21 = vector.broadcast %cst : f32 to vector<8x512xf32>
    %c24 = arith.constant 24 : index
    %c0 = arith.constant 0 : index
    %22 = vector.load %arg5[%c24, %c0] : memref<32x512xf32, #tpu.memory_space<vmem>>, vector<8x512xf32>
    tpu.vector_store %arg5[%c24, %c0], %21 {strides = array<i32>} : memref<32x512xf32, #tpu.memory_space<vmem>>, vector<8x512xf32>,
    %c0_4 = arith.constant 0 : index
    %c0_5 = arith.constant 0 : index
    %c0_6 = arith.constant 0 : index
    %23 = vector.load %arg1[%c0_4, %c0_5, %c0_6] : memref<2x3x290xf32, #tpu.memory_space<vmem>>, vector<1x3x256xf32>
    %24 = vector.shape_cast %23 : vector<1x3x256xf32> to vector<3x256xf32>
    %cst_7 = arith.constant 0.000000e+00 : f32
    %25 = vector.shape_cast %18 : vector<1x256xi1> to vector<1x256xi1>
    %26 = vector.broadcast %25 : vector<1x256xi1> to vector<3x256xi1>
    %27 = vector.broadcast %cst_7 : f32 to vector<3x256xf32>
    %28 = arith.select %26, %24, %27 : vector<3x256xi1>, vector<3x256xf32>
    %c0_8 = arith.constant 0 : index
    %c0_9 = arith.constant 0 : index
    %29 = vector.load %arg5[%c0_8, %c0_9] : memref<32x512xf32, #tpu.memory_space<vmem>>, vector<3x256xf32>
    tpu.vector_store %arg5[%c0_8, %c0_9], %28 {strides = array<i32>} : memref<32x512xf32, #tpu.memory_space<vmem>>, vector<3x256xf32>,
    %c1 = arith.constant 1 : index
    %c0_10 = arith.constant 0 : index
    %c0_11 = arith.constant 0 : index
    %30 = vector.load %arg1[%c1, %c0_10, %c0_11] : memref<2x3x290xf32, #tpu.memory_space<vmem>>, vector<1x3x256xf32>
    %31 = vector.shape_cast %30 : vector<1x3x256xf32> to vector<3x256xf32>
    %cst_12 = arith.constant 0.000000e+00 : f32
    %32 = vector.shape_cast %18 : vector<1x256xi1> to vector<1x256xi1>
    %33 = vector.broadcast %32 : vector<1x256xi1> to vector<3x256xi1>
    %34 = vector.broadcast %cst_12 : f32 to vector<3x256xf32>
    %35 = arith.select %33, %31, %34 : vector<3x256xi1>, vector<3x256xf32>
    %c0_13 = arith.constant 0 : index
    %c256 = arith.constant 256 : index
    %36 = vector.load %arg5[%c0_13, %c256] : memref<32x512xf32, #tpu.memory_space<vmem>>, vector<3x256xf32>
    tpu.vector_store %arg5[%c0_13, %c256], %35 {strides = array<i32>} : memref<32x512xf32, #tpu.memory_space<vmem>>, vector<3x256xf32>,
    %c0_14 = arith.constant 0 : index
    %c0_15 = arith.constant 0 : index
    %c1_16 = arith.constant 1 : index
    %37 = vector.load %arg1[%c0_14, %c0_15, %c1_16] : memref<2x3x290xf32, #tpu.memory_space<vmem>>, vector<1x3x256xf32>
    %38 = vector.shape_cast %37 : vector<1x3x256xf32> to vector<3x256xf32>
    %c3 = arith.constant 3 : index
    %c0_17 = arith.constant 0 : index
    %39 = vector.load %arg5[%c3, %c0_17] : memref<32x512xf32, #tpu.memory_space<vmem>>, vector<3x256xf32>
    tpu.vector_store %arg5[%c3, %c0_17], %38 {strides = array<i32>} : memref<32x512xf32, #tpu.memory_space<vmem>>, vector<3x256xf32>,
    %c1_18 = arith.constant 1 : index
    %c0_19 = arith.constant 0 : index
    %c1_20 = arith.constant 1 : index
    %40 = vector.load %arg1[%c1_18, %c0_19, %c1_20] : memref<2x3x290xf32, #tpu.memory_space<vmem>>, vector<1x3x256xf32>
    %41 = vector.shape_cast %40 : vector<1x3x256xf32> to vector<3x256xf32>
    %c3_21 = arith.constant 3 : index
    %c256_22 = arith.constant 256 : index
    %42 = vector.load %arg5[%c3_21, %c256_22] : memref<32x512xf32, #tpu.memory_space<vmem>>, vector<3x256xf32>
    tpu.vector_store %arg5[%c3_21, %c256_22], %41 {strides = array<i32>} : memref<32x512xf32, #tpu.memory_space<vmem>>, vector<3x256xf32>,
    %c0_23 = arith.constant 0 : index
    %c0_24 = arith.constant 0 : index
    %c2 = arith.constant 2 : index
    %43 = vector.load %arg1[%c0_23, %c0_24, %c2] : memref<2x3x290xf32, #tpu.memory_space<vmem>>, vector<1x3x256xf32>
    %44 = vector.shape_cast %43 : vector<1x3x256xf32> to vector<3x256xf32>
    %cst_25 = arith.constant 0.000000e+00 : f32
    %45 = vector.shape_cast %20 : vector<1x256xi1> to vector<1x256xi1>
    %46 = vector.broadcast %45 : vector<1x256xi1> to vector<3x256xi1>
    %47 = vector.broadcast %cst_25 : f32 to vector<3x256xf32>
    %48 = arith.select %46, %44, %47 : vector<3x256xi1>, vector<3x256xf32>
    %c6 = arith.constant 6 : index
    %c0_26 = arith.constant 0 : index
    %49 = vector.load %arg5[%c6, %c0_26] : memref<32x512xf32, #tpu.memory_space<vmem>>, vector<3x256xf32>
    tpu.vector_store %arg5[%c6, %c0_26], %48 {strides = array<i32>} : memref<32x512xf32, #tpu.memory_space<vmem>>, vector<3x256xf32>,
    %c1_27 = arith.constant 1 : index
    %c0_28 = arith.constant 0 : index
    %c2_29 = arith.constant 2 : index
    %50 = vector.load %arg1[%c1_27, %c0_28, %c2_29] : memref<2x3x290xf32, #tpu.memory_space<vmem>>, vector<1x3x256xf32>
    %51 = vector.shape_cast %50 : vector<1x3x256xf32> to vector<3x256xf32>
    %cst_30 = arith.constant 0.000000e+00 : f32
    %52 = vector.shape_cast %20 : vector<1x256xi1> to vector<1x256xi1>
    %53 = vector.broadcast %52 : vector<1x256xi1> to vector<3x256xi1>
    %54 = vector.broadcast %cst_30 : f32 to vector<3x256xf32>
    %55 = arith.select %53, %51, %54 : vector<3x256xi1>, vector<3x256xf32>
    %c6_31 = arith.constant 6 : index
    %c256_32 = arith.constant 256 : index
    %56 = vector.load %arg5[%c6_31, %c256_32] : memref<32x512xf32, #tpu.memory_space<vmem>>, vector<3x256xf32>
    tpu.vector_store %arg5[%c6_31, %c256_32], %55 {strides = array<i32>} : memref<32x512xf32, #tpu.memory_space<vmem>>, vector<3x256xf32>,
    %c0_33 = arith.constant 0 : index
    %c0_34 = arith.constant 0 : index
    %c16 = arith.constant 16 : index
    %57 = vector.load %arg1[%c0_33, %c0_34, %c16] : memref<2x3x290xf32, #tpu.memory_space<vmem>>, vector<1x3x256xf32>
    %58 = vector.shape_cast %57 : vector<1x3x256xf32> to vector<3x256xf32>
    %cst_35 = arith.constant 0.000000e+00 : f32
    %59 = vector.shape_cast %18 : vector<1x256xi1> to vector<1x256xi1>
    %60 = vector.broadcast %59 : vector<1x256xi1> to vector<3x256xi1>
    %61 = vector.broadcast %cst_35 : f32 to vector<3x256xf32>
    %62 = arith.select %60, %58, %61 : vector<3x256xi1>, vector<3x256xf32>
    %c9 = arith.constant 9 : index
    %c0_36 = arith.constant 0 : index
    %63 = vector.load %arg5[%c9, %c0_36] : memref<32x512xf32, #tpu.memory_space<vmem>>, vector<3x256xf32>
    tpu.vector_store %arg5[%c9, %c0_36], %62 {strides = array<i32>} : memref<32x512xf32, #tpu.memory_space<vmem>>, vector<3x256xf32>,
    %c1_37 = arith.constant 1 : index
    %c0_38 = arith.constant 0 : index
    %c16_39 = arith.constant 16 : index
    %64 = vector.load %arg1[%c1_37, %c0_38, %c16_39] : memref<2x3x290xf32, #tpu.memory_space<vmem>>, vector<1x3x256xf32>
    %65 = vector.shape_cast %64 : vector<1x3x256xf32> to vector<3x256xf32>
    %cst_40 = arith.constant 0.000000e+00 : f32
    %66 = vector.shape_cast %18 : vector<1x256xi1> to vector<1x256xi1>
    %67 = vector.broadcast %66 : vector<1x256xi1> to vector<3x256xi1>
    %68 = vector.broadcast %cst_40 : f32 to vector<3x256xf32>
    %69 = arith.select %67, %65, %68 : vector<3x256xi1>, vector<3x256xf32>
    %c9_41 = arith.constant 9 : index
    %c256_42 = arith.constant 256 : index
    %70 = vector.load %arg5[%c9_41, %c256_42] : memref<32x512xf32, #tpu.memory_space<vmem>>, vector<3x256xf32>
    tpu.vector_store %arg5[%c9_41, %c256_42], %69 {strides = array<i32>} : memref<32x512xf32, #tpu.memory_space<vmem>>, vector<3x256xf32>,
    %c0_43 = arith.constant 0 : index
    %c0_44 = arith.constant 0 : index
    %c17 = arith.constant 17 : index
    %71 = vector.load %arg1[%c0_43, %c0_44, %c17] : memref<2x3x290xf32, #tpu.memory_space<vmem>>, vector<1x3x256xf32>
    %72 = vector.shape_cast %71 : vector<1x3x256xf32> to vector<3x256xf32>
    %c12 = arith.constant 12 : index
    %c0_45 = arith.constant 0 : index
    %73 = vector.load %arg5[%c12, %c0_45] : memref<32x512xf32, #tpu.memory_space<vmem>>, vector<3x256xf32>
    tpu.vector_store %arg5[%c12, %c0_45], %72 {strides = array<i32>} : memref<32x512xf32, #tpu.memory_space<vmem>>, vector<3x256xf32>,
    %c1_46 = arith.constant 1 : index
    %c0_47 = arith.constant 0 : index
    %c17_48 = arith.constant 17 : index
    %74 = vector.load %arg1[%c1_46, %c0_47, %c17_48] : memref<2x3x290xf32, #tpu.memory_space<vmem>>, vector<1x3x256xf32>
    %75 = vector.shape_cast %74 : vector<1x3x256xf32> to vector<3x256xf32>
    %c12_49 = arith.constant 12 : index
    %c256_50 = arith.constant 256 : index
    %76 = vector.load %arg5[%c12_49, %c256_50] : memref<32x512xf32, #tpu.memory_space<vmem>>, vector<3x256xf32>
    tpu.vector_store %arg5[%c12_49, %c256_50], %75 {strides = array<i32>} : memref<32x512xf32, #tpu.memory_space<vmem>>, vector<3x256xf32>,
    %c0_51 = arith.constant 0 : index
    %c0_52 = arith.constant 0 : index
    %c18 = arith.constant 18 : index
    %77 = vector.load %arg1[%c0_51, %c0_52, %c18] : memref<2x3x290xf32, #tpu.memory_space<vmem>>, vector<1x3x256xf32>
    %78 = vector.shape_cast %77 : vector<1x3x256xf32> to vector<3x256xf32>
    %cst_53 = arith.constant 0.000000e+00 : f32
    %79 = vector.shape_cast %20 : vector<1x256xi1> to vector<1x256xi1>
    %80 = vector.broadcast %79 : vector<1x256xi1> to vector<3x256xi1>
    %81 = vector.broadcast %cst_53 : f32 to vector<3x256xf32>
    %82 = arith.select %80, %78, %81 : vector<3x256xi1>, vector<3x256xf32>
    %c15 = arith.constant 15 : index
    %c0_54 = arith.constant 0 : index
    %83 = vector.load %arg5[%c15, %c0_54] : memref<32x512xf32, #tpu.memory_space<vmem>>, vector<3x256xf32>
    tpu.vector_store %arg5[%c15, %c0_54], %82 {strides = array<i32>} : memref<32x512xf32, #tpu.memory_space<vmem>>, vector<3x256xf32>,
    %c1_55 = arith.constant 1 : index
    %c0_56 = arith.constant 0 : index
    %c18_57 = arith.constant 18 : index
    %84 = vector.load %arg1[%c1_55, %c0_56, %c18_57] : memref<2x3x290xf32, #tpu.memory_space<vmem>>, vector<1x3x256xf32>
    %85 = vector.shape_cast %84 : vector<1x3x256xf32> to vector<3x256xf32>
    %cst_58 = arith.constant 0.000000e+00 : f32
    %86 = vector.shape_cast %20 : vector<1x256xi1> to vector<1x256xi1>
    %87 = vector.broadcast %86 : vector<1x256xi1> to vector<3x256xi1>
    %88 = vector.broadcast %cst_58 : f32 to vector<3x256xf32>
    %89 = arith.select %87, %85, %88 : vector<3x256xi1>, vector<3x256xf32>
    %c15_59 = arith.constant 15 : index
    %c256_60 = arith.constant 256 : index
    %90 = vector.load %arg5[%c15_59, %c256_60] : memref<32x512xf32, #tpu.memory_space<vmem>>, vector<3x256xf32>
    tpu.vector_store %arg5[%c15_59, %c256_60], %89 {strides = array<i32>} : memref<32x512xf32, #tpu.memory_space<vmem>>, vector<3x256xf32>,
    %c0_61 = arith.constant 0 : index
    %c0_62 = arith.constant 0 : index
    %c32 = arith.constant 32 : index
    %91 = vector.load %arg1[%c0_61, %c0_62, %c32] : memref<2x3x290xf32, #tpu.memory_space<vmem>>, vector<1x3x256xf32>
    %92 = vector.shape_cast %91 : vector<1x3x256xf32> to vector<3x256xf32>
    %cst_63 = arith.constant 0.000000e+00 : f32
    %93 = vector.shape_cast %18 : vector<1x256xi1> to vector<1x256xi1>
    %94 = vector.broadcast %93 : vector<1x256xi1> to vector<3x256xi1>
    %95 = vector.broadcast %cst_63 : f32 to vector<3x256xf32>
    %96 = arith.select %94, %92, %95 : vector<3x256xi1>, vector<3x256xf32>
    %c18_64 = arith.constant 18 : index
    %c0_65 = arith.constant 0 : index
    %97 = vector.load %arg5[%c18_64, %c0_65] : memref<32x512xf32, #tpu.memory_space<vmem>>, vector<3x256xf32>
    tpu.vector_store %arg5[%c18_64, %c0_65], %96 {strides = array<i32>} : memref<32x512xf32, #tpu.memory_space<vmem>>, vector<3x256xf32>,
    %c1_66 = arith.constant 1 : index
    %c0_67 = arith.constant 0 : index
    %c32_68 = arith.constant 32 : index
    %98 = vector.load %arg1[%c1_66, %c0_67, %c32_68] : memref<2x3x290xf32, #tpu.memory_space<vmem>>, vector<1x3x256xf32>
    %99 = vector.shape_cast %98 : vector<1x3x256xf32> to vector<3x256xf32>
    %cst_69 = arith.constant 0.000000e+00 : f32
    %100 = vector.shape_cast %18 : vector<1x256xi1> to vector<1x256xi1>
    %101 = vector.broadcast %100 : vector<1x256xi1> to vector<3x256xi1>
    %102 = vector.broadcast %cst_69 : f32 to vector<3x256xf32>
    %103 = arith.select %101, %99, %102 : vector<3x256xi1>, vector<3x256xf32>
    %c18_70 = arith.constant 18 : index
    %c256_71 = arith.constant 256 : index
    %104 = vector.load %arg5[%c18_70, %c256_71] : memref<32x512xf32, #tpu.memory_space<vmem>>, vector<3x256xf32>
    tpu.vector_store %arg5[%c18_70, %c256_71], %103 {strides = array<i32>} : memref<32x512xf32, #tpu.memory_space<vmem>>, vector<3x256xf32>,
    %c0_72 = arith.constant 0 : index
    %c0_73 = arith.constant 0 : index
    %c33 = arith.constant 33 : index
    %105 = vector.load %arg1[%c0_72, %c0_73, %c33] : memref<2x3x290xf32, #tpu.memory_space<vmem>>, vector<1x3x256xf32>
    %106 = vector.shape_cast %105 : vector<1x3x256xf32> to vector<3x256xf32>
    %c21 = arith.constant 21 : index
    %c0_74 = arith.constant 0 : index
    %107 = vector.load %arg5[%c21, %c0_74] : memref<32x512xf32, #tpu.memory_space<vmem>>, vector<3x256xf32>
    tpu.vector_store %arg5[%c21, %c0_74], %106 {strides = array<i32>} : memref<32x512xf32, #tpu.memory_space<vmem>>, vector<3x256xf32>,
    %c1_75 = arith.constant 1 : index
    %c0_76 = arith.constant 0 : index
    %c33_77 = arith.constant 33 : index
    %108 = vector.load %arg1[%c1_75, %c0_76, %c33_77] : memref<2x3x290xf32, #tpu.memory_space<vmem>>, vector<1x3x256xf32>
    %109 = vector.shape_cast %108 : vector<1x3x256xf32> to vector<3x256xf32>
    %c21_78 = arith.constant 21 : index
    %c256_79 = arith.constant 256 : index
    %110 = vector.load %arg5[%c21_78, %c256_79] : memref<32x512xf32, #tpu.memory_space<vmem>>, vector<3x256xf32>
    tpu.vector_store %arg5[%c21_78, %c256_79], %109 {strides = array<i32>} : memref<32x512xf32, #tpu.memory_space<vmem>>, vector<3x256xf32>,
    %c0_80 = arith.constant 0 : index
    %c0_81 = arith.constant 0 : index
    %c34 = arith.constant 34 : index
    %111 = vector.load %arg1[%c0_80, %c0_81, %c34] : memref<2x3x290xf32, #tpu.memory_space<vmem>>, vector<1x3x256xf32>
    %112 = vector.shape_cast %111 : vector<1x3x256xf32> to vector<3x256xf32>
    %cst_82 = arith.constant 0.000000e+00 : f32
    %113 = vector.shape_cast %20 : vector<1x256xi1> to vector<1x256xi1>
    %114 = vector.broadcast %113 : vector<1x256xi1> to vector<3x256xi1>
    %115 = vector.broadcast %cst_82 : f32 to vector<3x256xf32>
    %116 = arith.select %114, %112, %115 : vector<3x256xi1>, vector<3x256xf32>
    %c24_83 = arith.constant 24 : index
    %c0_84 = arith.constant 0 : index
    %117 = vector.load %arg5[%c24_83, %c0_84] : memref<32x512xf32, #tpu.memory_space<vmem>>, vector<3x256xf32>
    tpu.vector_store %arg5[%c24_83, %c0_84], %116 {strides = array<i32>} : memref<32x512xf32, #tpu.memory_space<vmem>>, vector<3x256xf32>,
    %c1_85 = arith.constant 1 : index
    %c0_86 = arith.constant 0 : index
    %c34_87 = arith.constant 34 : index
    %118 = vector.load %arg1[%c1_85, %c0_86, %c34_87] : memref<2x3x290xf32, #tpu.memory_space<vmem>>, vector<1x3x256xf32>
    %119 = vector.shape_cast %118 : vector<1x3x256xf32> to vector<3x256xf32>
    %cst_88 = arith.constant 0.000000e+00 : f32
    %120 = vector.shape_cast %20 : vector<1x256xi1> to vector<1x256xi1>
    %121 = vector.broadcast %120 : vector<1x256xi1> to vector<3x256xi1>
    %122 = vector.broadcast %cst_88 : f32 to vector<3x256xf32>
    %123 = arith.select %121, %119, %122 : vector<3x256xi1>, vector<3x256xf32>
    %c24_89 = arith.constant 24 : index
    %c256_90 = arith.constant 256 : index
    %124 = vector.load %arg5[%c24_89, %c256_90] : memref<32x512xf32, #tpu.memory_space<vmem>>, vector<3x256xf32>
    tpu.vector_store %arg5[%c24_89, %c256_90], %123 {strides = array<i32>} : memref<32x512xf32, #tpu.memory_space<vmem>>, vector<3x256xf32>,
    %c0_91 = arith.constant 0 : index
    %c0_92 = arith.constant 0 : index
    %125 = vector.load %arg2[%c0_91, %c0_92] : memref<25x32xf32, #tpu.memory_space<vmem>>, vector<25x32xf32>
    %c0_93 = arith.constant 0 : index
    %c0_94 = arith.constant 0 : index
    %126 = vector.load %arg5[%c0_93, %c0_94] : memref<32x512xf32, #tpu.memory_space<vmem>>, vector<32x512xf32>
    %cst_95 = arith.constant dense<0.000000e+00> : vector<25x512xf32>
    %127 = tpu.matmul %125, %126, %cst_95 {dimension_numbers = #tpu.dot_dimension_numbers<[1], [0], [0], [1], [0, 0, 1, 1], [], []>} : vector<25x32xf32>, vector<32x512xf32>, vector<25x512xf32> -> vector<25x512xf32>
    %c0_96 = arith.constant 0 : index
    %c0_97 = arith.constant 0 : index
    %128 = vector.load %arg3[%c0_96, %c0_97] : memref<25x1xf32, #tpu.memory_space<vmem>>, vector<25x1xf32>
    %129 = vector.broadcast %128 : vector<25x1xf32> to vector<25x512xf32>
    %130 = arith.addf %127, %129 : vector<25x512xf32>
    %131 = vector.extract_strided_slice %130 {offsets = [0, 0], sizes = [25, 256], strides = [1, 1]} : vector<25x512xf32> to vector<25x256xf32>
    %c0_98 = arith.constant 0 : index
    %c0_99 = arith.constant 0 : index
    %c0_100 = arith.constant 0 : index
    %132 = vector.load %arg4[%c0_98, %c0_99, %c0_100] : memref<2x25x256xf32, #tpu.memory_space<vmem>>, vector<1x25x256xf32>
    %133 = vector.shape_cast %132 : vector<1x25x256xf32> to vector<25x256xf32>
    %134 = vector.shape_cast %131 : vector<25x256xf32> to vector<1x25x256xf32>
    tpu.vector_store %arg4[%c0_98, %c0_99, %c0_100], %134 {strides = array<i32>} : memref<2x25x256xf32, #tpu.memory_space<vmem>>, vector<1x25x256xf32>,
    %135 = vector.extract_strided_slice %130 {offsets = [0, 256], sizes = [25, 256], strides = [1, 1]} : vector<25x512xf32> to vector<25x256xf32>
    %c1_101 = arith.constant 1 : index
    %c0_102 = arith.constant 0 : index
    %c0_103 = arith.constant 0 : index
    %136 = vector.load %arg4[%c1_101, %c0_102, %c0_103] : memref<2x25x256xf32, #tpu.memory_space<vmem>>, vector<1x25x256xf32>
    %137 = vector.shape_cast %136 : vector<1x25x256xf32> to vector<25x256xf32>
    %138 = vector.shape_cast %135 : vector<25x256xf32> to vector<1x25x256xf32>
    tpu.vector_store %arg4[%c1_101, %c0_102, %c0_103], %138 {strides = array<i32>} : memref<2x25x256xf32, #tpu.memory_space<vmem>>, vector<1x25x256xf32>,
    return
  }
  func.func @transform_0(%arg0: i32) -> (i32, i32, i32) {
    %c0_i32 = arith.constant 0 : i32
    %c0_i32_0 = arith.constant 0 : i32
    %c0_i32_1 = arith.constant 0 : i32
    %c0_i32_2 = arith.constant 0 : i32
    return %c0_i32, %c0_i32_0, %c0_i32_1 : i32, i32, i32
  }
  func.func @transform_1(%arg0: i32) -> (i32, i32) {
    %c0_i32 = arith.constant 0 : i32
    %c0_i32_0 = arith.constant 0 : i32
    %c0_i32_1 = arith.constant 0 : i32
    return %c0_i32, %c0_i32_0 : i32, i32
  }
  func.func @transform_2(%arg0: i32) -> (i32, i32) {
    %c0_i32 = arith.constant 0 : i32
    %c0_i32_0 = arith.constant 0 : i32
    %c0_i32_1 = arith.constant 0 : i32
    return %c0_i32, %c0_i32_0 : i32, i32
  }
  func.func @transform_3(%arg0: i32) -> (i32, i32, i32) {
    %c0_i32 = arith.constant 0 : i32
    %c0_i32_0 = arith.constant 0 : i32
    %c0_i32_1 = arith.constant 0 : i32
    %c0_i32_2 = arith.constant 0 : i32
    return %c0_i32, %c0_i32_0, %c0_i32_1 : i32, i32, i32
  }
}

</mosaic_0001>

<bundles_post_ra>
// kernel: encoder_forward.1
= control target key start
LH: loop header
LB: loop body
LE: loop exit
PB: predicated region body
PF: predicated region fallthrough
CT: control target
= control target key end

     0   :  { %s781_s18 = smov 126   ;;  %s782_s27 = smov 112   ;;  %v14_v13 = vlaneseq  ;;  %v787_v56 = vmov 0.0   ;;  %vm126_vm2 = vcmask 1031168   ;;  %vm181_vm4 = vcmask 916480   ;;  %s1128_s0 = inlined_call_operand.vmem [shape: f32[2,3,290], index: 0, kind: input, shape index: {}]   ;;  %s1129_s2 = inlined_call_operand.vmem [shape: f32[25,1], index: 2, kind: input, shape index: {}]   ;;  %s1130_s1 = inlined_call_operand.vmem [shape: f32[25,32], index: 1, kind: input, shape index: {}]   ;;  %s1131_s3 = inlined_call_operand.vmem [shape: f32[2,25,256], index: 3, kind: output, shape index: {}]  }
   0x1   :  { %v704_v0 = vld [vmem:[%s1128_s0 + $0x14] sm:$0x7]  ;;  %v112_v1 = vld [vmem:[%s1128_s0 + $0x8] sm:$0x7]  ;;  %v703_v2 = vld [vmem:[%s1128_s0 + $0xc] sm:$0x77]  ;;  %565 = vmatprep.mubr.f32.mxu0 %v787_v56  ;;  %654 = vmatprep.mubr.f32.mxu1 %v787_v56 }
   0x2   :  { %152 = vrot.lane.b32.xlu1 %v704_v0, %s781_s18  ;;  %124 = vrot.lane.b32.xlu0 %v112_v1, %s781_s18  ;;  %v147_v3 = vcombine.high %v703_v2, %v703_v2  ;;  %v111_v4 = vld [vmem:[%s1128_s0] sm:$0x77]  ;;  %v171_v8 = vld [vmem:[%s1128_s0 + $0x8] sm:$0x7]  ;;  %v852_v17 = vand.u32 127, %v14_v13  ;;  %s783_s13 = smov 110  }
   0x3   :  { %v119_v5 = vcombine.high %v111_v4, %v111_v4  ;;  %v170_v6 = vld [vmem:[%s1128_s0] sm:$0x77]  ;;  %v705_v9 = vld [vmem:[%s1128_s0 + $0xc] sm:$0x77]  ;;  %v706_v11 = vld [vmem:[%s1128_s0 + $0x14] sm:$0x7] }
   0x4   :  { %v174_v7 = vcombine.high %v170_v6, %v170_v6  ;;  %v200_v10 = vcombine.high %v705_v9, %v705_v9  ;;  %v258_v12 = vld [vmem:[%s1128_s0] sm:$0x77]  ;;  %v259_v14 = vld [vmem:[%s1128_s0 + $0x8] sm:$0x7]  ;;  %v709_v16 = vld [vmem:[%s1128_s0 + $0xc] sm:$0x77] }
   0x5   :  { %v262_v15 = vcombine.high %v258_v12, %v258_v12  ;;  %v49_v18 = vld [vmem:[%s1128_s0] sm:$0x77]  ;;  %v700_v19 = vld [vmem:[%s1128_s0 + $0xc] sm:$0x77]  ;;  %v861_v20 = vadd.s32 128, %v852_v17  ;;  %v21_v21 = vand.u32 15, %v852_v17  ;;  %v290_v22 = vcombine.high %v709_v16, %v709_v16 }
   0x6   :  { %150 = vrot.lane.b32.xlu1 %v147_v3, %s781_s18  ;;  %122 = vrot.lane.b32.xlu0 %v119_v5, %s781_s18  ;;  %v55_v23 = vcombine.high %v49_v18, %v49_v18  ;;  %v64_v24 = vcombine.high %v700_v19, %v700_v19  ;;  %v710_v25 = vld [vmem:[%s1128_s0 + $0x14] sm:$0x7]  ;;  %v70_v33 = vld [vmem:[%s1128_s0] sm:$0x77]  ;;  %s784_s24 = smov 127   ;;  %s785_s29 = smov 111  }
   0x7   :  { %v28_v26 = vand.u32 15, %v861_v20  ;;  %vm870_vm0 = vcmp.ne.s32.totalorder %v21_v21, 0  ;;  %v74_v34 = vcombine.high %v70_v33, %v70_v33  ;;  %v71_v35 = vld [vmem:[%s1128_s0 + $0x8] sm:$0x7]  ;;  %v701_v36 = vld [vmem:[%s1128_s0 + $0xc] sm:$0x77] }
   0x8   :  { %v57_v28 = vsel %vm870_vm0, %v49_v18, 0.0  ;;  %v66_v29 = vsel %vm870_vm0, %v700_v19, 0.0  ;;  %v77_v37 = vrot.slane %v71_v35, 5  ;;  %v95_v39 = vcombine.high %v701_v36, %v701_v36  ;;  %v702_v40 = vld [vmem:[%s1128_s0 + $0x14] sm:$0x7]  ;;  %46 = vst [vmem:[#allocation2 + $0x68] sm:$0xff] %v787_v56 }
   0x9   :  { %vm880_vm1 = vcmp.ne.s32.totalorder %v28_v26, 0  ;;  %59 = vst [vmem:[#allocation2] sm:$0x7] %v57_v28  ;;  %68 = vst [vmem:[#allocation2 + $0x10] sm:$0x7] %v66_v29  ;;  %v76_v38 = vrot.slane %v74_v34, 5 }
   0xa   :  { %179 = vrot.lane.b32.xlu1 %v171_v8, %s782_s27  ;;  %177 = vrot.lane.b32.xlu0 %v174_v7, %s782_s27  ;;  %v58_v31 = vsel %vm880_vm1, %v55_v23, 0.0  ;;  %v67_v32 = vsel %vm880_vm1, %v64_v24, 0.0  ;;  %v98_v41 = vrot.slane %v702_v40, 5  ;;  %v97_v42 = vrot.slane %v95_v39, 5  ;;  %v221_v44 = vld [vmem:[%s1128_s0] sm:$0x77] }
   0xb   :  { %60 = vst [vmem:[#allocation2 + $0x8] sm:$0x7] %v58_v31  ;;  %69 = vst [vmem:[#allocation2 + $0x18] sm:$0x7] %v67_v32  ;;  %v707_v46 = vld [vmem:[%s1128_s0 + $0xc] sm:$0x77]  ;;  %v225_v49 = vcombine.low %v221_v44, %v221_v44 }
   0xc   :  { %v769_v43 = vld [vmem:[%s1128_s0 + $0x8] ss:$0 sps:$4 sm:$0x77]   ;;  %v771_v45 = vld [vmem:[%s1128_s0 + $0x14] ss:$0 sps:$4 sm:$0x77]   ;;  %v244_v50 = vcombine.low %v707_v46, %v707_v46 }
   0xd   :  { %v96_v47 = vrot.slane %v701_v36, 5  ;;  %v75_v48 = vrot.slane %v70_v33, 5  ;;  %v313_v51 = vld [vmem:[%s1128_s0] sm:$0x77]  ;;  %v314_v53 = vld [vmem:[%s1128_s0 + $0x8] sm:$0x7] }
   0xe   :  { %205 = vrot.lane.b32.xlu1 %v706_v11, %s782_s27  ;;  %203 = vrot.lane.b32.xlu0 %v200_v10, %s782_s27  ;;  %v317_v52 = vcombine.high %v313_v51, %v313_v51  ;;  %v711_v54 = vld [vmem:[%s1128_s0 + $0xc] sm:$0x77]  ;;  %45 = vst [vmem:[#allocation2 + $0x60] sm:$0xff] %v787_v56  ;;  %47 = vst [vmem:[#allocation2 + $0x70] sm:$0xff] %v787_v56  ;;  %v712_v57 = vld [vmem:[%s1128_s0 + $0x14] sm:$0x7] }
   0xf   :  { %v343_v55 = vcombine.high %v711_v54, %v711_v54  ;;  %48 = vst [vmem:[#allocation2 + $0x78] sm:$0xff] %v787_v56  ;;  %v405_v58 = vld [vmem:[%s1128_s0] sm:$0x77]  ;;  %v406_v59 = vld [vmem:[%s1128_s0 + $0x8] sm:$0x7]  ;;  %s789_s6 = smov 95  }
  0x10   :  { %v409_v60 = vcombine.high %v405_v58, %v405_v58  ;;  %v715_v61 = vld [vmem:[%s1128_s0 + $0xc] sm:$0x77]  ;;  %v364_v62 = vld [vmem:[%s1128_s0] sm:$0x77]  ;;  %v716_v1 = vld [vmem:[%s1128_s0 + $0x14] sm:$0x7] }
  0x11   :  { %v429_v63 = vcombine.high %v715_v61, %v715_v61  ;;  %v368_v0 = vcombine.high %v364_v62, %v364_v62  ;;  %v713_v3 = vld [vmem:[%s1128_s0 + $0xc] sm:$0x77]  ;;  %v714_v7 = vld [vmem:[%s1128_s0 + $0x14] sm:$0x7]  ;;  %v369_v11 = vrot.slane %v364_v62, 3  ;;  %v464_v13 = vld [vmem:[%s1129_s2] sm:$0xff] }
  0x12   :  { %267 = vrot.lane.b32.xlu1 %v259_v14, %s783_s13  ;;  %265 = vrot.lane.b32.xlu0 %v262_v15, %s783_s13  ;;  %v392_v8 = vrot.slane %v714_v7, 3  ;;  %v390_v10 = vrot.slane %v713_v3, 3  ;;  %v465_v14 = vld [vmem:[%s1129_s2 + $0x8] sm:$0xff]  ;;  %v466_v15 = vld [vmem:[%s1129_s2 + $0x10] sm:$0xff]  ;;  %vm972_vm3 = vcmp.ne.s32.totalorder %v28_v26, 15  ;;  %vm269_vm5 = vcmask 900096  }
  0x13   :  { %v370_v5 = vrot.slane %v368_v0, 3  ;;  %vm996_vm6 = vcmp.ne.s32.totalorder %v21_v21, 15  ;;  %vm84_vm7 = vcmask 1039360   ;;  %vm233_vm8 = vcmask 908288  }
  0x14   :  { %vm324_vm9 = vcmask 785408   ;;  %vm416_vm10 = vcmask 769024   ;;  %vm378_vm11 = vcmask 777216   ;;  %vm488_vm12 = vcmask 261120  }
  0x16   :  { %295 = vrot.lane.b32.xlu1 %v710_v25, %s783_s13  ;;  %293 = vrot.lane.b32.xlu0 %v290_v22, %s783_s13 }
  0x1a   :  { %148 = vrot.lane.b32.xlu1 %v703_v2, %s781_s18  ;;  %120 = vrot.lane.b32.xlu0 %v111_v4, %s781_s18  ;;  %v365_v2 = vld [vmem:[%s1128_s0 + $0x8] sm:$0x7] }
  0x1b   :  { %v371_v4 = vrot.slane %v365_v2, 3 }
  0x1e   :  { %201 = vrot.lane.b32.xlu1 %v705_v9, %s782_s27  ;;  %175 = vrot.lane.b32.xlu0 %v170_v6, %s782_s27  ;;  %v389_v6 = vcombine.high %v713_v3, %v713_v3 }
  0x20   :  { %v391_v9 = vrot.slane %v389_v6, 3 }
  0x22   :  { %291 = vrot.lane.b32.xlu1 %v709_v16, %s783_s13  ;;  %263 = vrot.lane.b32.xlu0 %v258_v12, %s783_s13  ;;  %s786_s13 = smov 96   ;;  %v790_v12 = vmov 0   ;;  %v467_v16 = vld [vmem:[%s1129_s2 + $0x18] sm:$0x1] }
  0x23   :  { %759 = vset.pattern.permute.xlu0 %v790_v12  ;;  %760 = vset.pattern.permute.xlu1 %v790_v12 }
  0x26   :  { %82 = vrot.lane.b32.xlu1 %v77_v37, %s784_s24  ;;  %80 = vrot.lane.b32.xlu0 %v76_v38, %s784_s24 }
  0x2a   :  { %103 = vrot.lane.b32.xlu1 %v98_v41, %s784_s24  ;;  %101 = vrot.lane.b32.xlu0 %v97_v42, %s784_s24 }
  0x2e   :  { %231 = vrot.lane.b32.xlu1 %v769_v43, %s785_s29  ;;  %229 = vrot.lane.b32.xlu0 %v221_v44, %s785_s29 }
  0x32   :  { %250 = vrot.lane.b32.xlu1 %v771_v45, %s785_s29  ;;  %248 = vrot.lane.b32.xlu0 %v707_v46, %s785_s29 }
  0x36   :  { %99 = vrot.lane.b32.xlu1 %v96_v47, %s784_s24  ;;  %78 = vrot.lane.b32.xlu0 %v75_v48, %s784_s24  ;;  %s788_s24 = smov 94  }
  0x3a   :  { %246 = vrot.lane.b32.xlu1 %v244_v50, %s785_s29  ;;  %227 = vrot.lane.b32.xlu0 %v225_v49, %s785_s29 }
  0x3e   :  { %322 = vrot.lane.b32.xlu1 %v314_v53, %s786_s13  ;;  %320 = vrot.lane.b32.xlu0 %v317_v52, %s786_s13 }
  0x42   :  { %348 = vrot.lane.b32.xlu1 %v712_v57, %s786_s13  ;;  %346 = vrot.lane.b32.xlu0 %v343_v55, %s786_s13 }
  0x46   :  { %344 = vrot.lane.b32.xlu1 %v711_v54, %s786_s13  ;;  %318 = vrot.lane.b32.xlu0 %v313_v51, %s786_s13 }
  0x4a   :  { %414 = vrot.lane.b32.xlu1 %v406_v59, %s788_s24  ;;  %412 = vrot.lane.b32.xlu0 %v409_v60, %s788_s24 }
  0x4e   :  { %434 = vrot.lane.b32.xlu1 %v716_v1, %s788_s24  ;;  %432 = vrot.lane.b32.xlu0 %v429_v63, %s788_s24 }
  0x52   :  { %376 = vrot.lane.b32.xlu1 %v371_v4, %s789_s6  ;;  %374 = vrot.lane.b32.xlu0 %v370_v5, %s789_s6 }
  0x56   :  { %397 = vrot.lane.b32.xlu1 %v392_v8, %s789_s6  ;;  %395 = vrot.lane.b32.xlu0 %v391_v9, %s789_s6 }
  0x5a   :  { %430 = vrot.lane.b32.xlu1 %v715_v61, %s788_s24  ;;  %410 = vrot.lane.b32.xlu0 %v405_v58, %s788_s24 }
  0x5e   :  { %393 = vrot.lane.b32.xlu1 %v390_v10, %s789_s6  ;;  %372 = vrot.lane.b32.xlu0 %v369_v11, %s789_s6 }
  0x62   :  { %470 = vperm.xlu0 %759, %v464_v13   ;;  %475 = vperm.xlu1 %760, %v465_v14  }
  0x66   :  { %480 = vperm.xlu1 %760, %v466_v15   ;;  %485 = vperm.xlu0 %759, %v467_v16  }
  0x74   :  { %v153_v18 = vpop.permute.xlu1 %152  ;;  %v125_v19 = vpop.permute.xlu0 %124 }
  0x78   :  { %v151_v23 = vpop.permute.xlu1 %150  ;;  %v123_v24 = vpop.permute.xlu0 %122 }
  0x79   :  { %v155_v25 = vsel %vm126_vm2, %v151_v23, %v153_v18  ;;  %v128_v28 = vsel %vm126_vm2, %v123_v24, %v125_v19 }
  0x7a   :  { %v159_v29 = vsel %vm972_vm3, %v155_v25, 0.0  ;;  %v132_v31 = vsel %vm972_vm3, %v128_v28, 0.0 }
  0x7b   :  { %v163_v32 = vrot.slane %v159_v29, 2  ;;  %v136_v33 = vrot.slane %v132_v31, 2 }
  0x7c   :  { %v180_v20 = vpop.permute.xlu1 %179  ;;  %v178_v26 = vpop.permute.xlu0 %177 }
  0x7d   :  { %167 = vst [vmem:[#allocation2 + $0x38] ss:$-28 sps:$4 sm:$0xc1] %v163_v32   ;;  %140 = vst [vmem:[#allocation2 + $0x28] ss:$-28 sps:$4 sm:$0xc1] %v136_v33   ;;  %v183_v34 = vsel %vm181_vm4, %v178_v26, %v180_v20 }
  0x7e   :  { %v187_v35 = vsel %vm880_vm1, %v183_v34, 0.0 }
  0x7f   :  { %v191_v36 = vrot.slane %v187_v35, 7 }
  0x80   :  { %v206_v37 = vpop.permute.xlu1 %205  ;;  %v204_v38 = vpop.permute.xlu0 %203 }
  0x81   :  { %195 = vst [vmem:[#allocation2 + $0x28] sm:$0xe] %v191_v36  ;;  %v208_v39 = vsel %vm181_vm4, %v204_v38, %v206_v37 }
  0x82   :  { %v212_v40 = vsel %vm880_vm1, %v208_v39, 0.0 }
  0x83   :  { %v216_v41 = vrot.slane %v212_v40, 7 }
  0x84   :  { %v268_v42 = vpop.permute.xlu1 %267  ;;  %v266_v43 = vpop.permute.xlu0 %265 }
  0x85   :  { %220 = vst [vmem:[#allocation2 + $0x38] sm:$0xe] %v216_v41  ;;  %v271_v44 = vsel %vm269_vm5, %v266_v43, %v268_v42 }
  0x86   :  { %v275_v45 = vsel %vm972_vm3, %v271_v44, 0.0 }
  0x87   :  { %v279_v46 = vrot.slane %v275_v45, 1 }
  0x88   :  { %v296_v47 = vpop.permute.xlu1 %295  ;;  %v294_v48 = vpop.permute.xlu0 %293 }
  0x89   :  { %283 = vst [vmem:[#allocation2 + $0x48] ss:$-28 sps:$4 sm:$0x83] %v279_v46   ;;  %v298_v49 = vsel %vm269_vm5, %v294_v48, %v296_v47 }
  0x8a   :  { %v302_v50 = vsel %vm972_vm3, %v298_v49, 0.0 }
  0x8b   :  { %v306_v51 = vrot.slane %v302_v50, 1 }
  0x8c   :  { %v149_v53 = vpop.permute.xlu1 %148  ;;  %v121_v54 = vpop.permute.xlu0 %120 }
  0x8d   :  { %310 = vst [vmem:[#allocation2 + $0x58] ss:$-28 sps:$4 sm:$0x83] %v306_v51   ;;  %v154_v55 = vsel %vm126_vm2, %v149_v53, %v151_v23  ;;  %v127_v57 = vsel %vm126_vm2, %v121_v54, %v123_v24 }
  0x8e   :  { %v158_v58 = vsel %vm996_vm6, %v154_v55, 0.0  ;;  %v131_v59 = vsel %vm996_vm6, %v127_v57, 0.0 }
  0x8f   :  { %v162_v60 = vrot.slane %v158_v58, 2  ;;  %v135_v61 = vrot.slane %v131_v59, 2 }
  0x90   :  { %v202_v17 = vpop.permute.xlu1 %201  ;;  %v176_v21 = vpop.permute.xlu0 %175 }
  0x91   :  { %166 = vst [vmem:[#allocation2 + $0x30] ss:$-28 sps:$4 sm:$0xc1] %v162_v60   ;;  %139 = vst [vmem:[#allocation2 + $0x20] ss:$-28 sps:$4 sm:$0xc1] %v135_v61   ;;  %v207_v62 = vsel %vm181_vm4, %v202_v17, %v204_v38  ;;  %v182_v63 = vsel %vm181_vm4, %v176_v21, %v178_v26 }
  0x92   :  { %v211_v0 = vsel %vm870_vm0, %v207_v62, 0.0  ;;  %v186_v1 = vsel %vm870_vm0, %v182_v63, 0.0 }
  0x93   :  { %v215_v2 = vrot.slane %v211_v0, 7  ;;  %v190_v3 = vrot.slane %v186_v1, 7 }
  0x94   :  { %v292_v4 = vpop.permute.xlu1 %291  ;;  %v264_v5 = vpop.permute.xlu0 %263 }
  0x95   :  { %219 = vst [vmem:[#allocation2 + $0x30] sm:$0xe] %v215_v2  ;;  %194 = vst [vmem:[#allocation2 + $0x20] sm:$0xe] %v190_v3  ;;  %v297_v6 = vsel %vm269_vm5, %v292_v4, %v294_v48  ;;  %v270_v7 = vsel %vm269_vm5, %v264_v5, %v266_v43 }
  0x96   :  { %v301_v8 = vsel %vm996_vm6, %v297_v6, 0.0  ;;  %v274_v9 = vsel %vm996_vm6, %v270_v7, 0.0 }
  0x97   :  { %v305_v10 = vrot.slane %v301_v8, 1  ;;  %v278_v11 = vrot.slane %v274_v9, 1 }
  0x98   :  { %v83_v12 = vpop.permute.xlu1 %82  ;;  %v81_v13 = vpop.permute.xlu0 %80 }
  0x99   :  { %309 = vst [vmem:[#allocation2 + $0x50] ss:$-28 sps:$4 sm:$0x83] %v305_v10   ;;  %282 = vst [vmem:[#allocation2 + $0x40] ss:$-28 sps:$4 sm:$0x83] %v278_v11   ;;  %v86_v14 = vsel %vm84_vm7, %v81_v13, %v83_v12 }
  0x9a   :  { %90 = vst [vmem:[#allocation2 + $0x8] sm:$0x38] %v86_v14 }
  0x9c   :  { %v104_v15 = vpop.permute.xlu1 %103  ;;  %v102_v16 = vpop.permute.xlu0 %101 }
  0x9d   :  { %v106_v18 = vsel %vm84_vm7, %v102_v16, %v104_v15 }
  0x9e   :  { %110 = vst [vmem:[#allocation2 + $0x18] sm:$0x38] %v106_v18 }
  0xa0   :  { %v232_v19 = vpop.permute.xlu1 %231  ;;  %v230_v23 = vpop.permute.xlu0 %229 }
  0xa1   :  { %v235_v24 = vsel %vm233_vm8, %v230_v23, %v232_v19  ;;  %v449_v26 = vld [vmem:[#allocation2 + $0x8] sm:$0xff] }
  0xa2   :  { %239 = vst [vmem:[#allocation2 + $0x28] sm:$0x70] %v235_v24 }
  0xa4   :  { %v251_v25 = vpop.permute.xlu1 %250  ;;  %v249_v28 = vpop.permute.xlu0 %248 }
  0xa5   :  { %v253_v29 = vsel %vm233_vm8, %v249_v28, %v251_v25  ;;  %v451_v40 = vld [vmem:[#allocation2 + $0x18] sm:$0xff] }
  0xa6   :  { %257 = vst [vmem:[#allocation2 + $0x38] sm:$0x70] %v253_v29 }
  0xa8   :  { %v100_v31 = vpop.permute.xlu1 %99  ;;  %v79_v32 = vpop.permute.xlu0 %78 }
  0xa9   :  { %v105_v33 = vsel %vm84_vm7, %v100_v31, %v102_v16  ;;  %v85_v20 = vsel %vm84_vm7, %v79_v32, %v81_v13  ;;  %v453_v34 = vld [vmem:[#allocation2 + $0x28] sm:$0xff] }
  0xaa   :  { %109 = vst [vmem:[#allocation2 + $0x10] sm:$0x38] %v105_v33  ;;  %89 = vst [vmem:[#allocation2] sm:$0x38] %v85_v20  ;;  %v733_v35 = vpack.c.bf16 %v453_v34, %v449_v26 }
  0xac   :  { %v247_v36 = vpop.permute.xlu1 %246  ;;  %v228_v37 = vpop.permute.xlu0 %227  ;;  %734 = vmatprep.subr.bf16.mxu0 %v733_v35 }
  0xad   :  { %v252_v38 = vsel %vm233_vm8, %v247_v36, %v249_v28  ;;  %v234_v39 = vsel %vm233_vm8, %v228_v37, %v230_v23  ;;  %v455_v41 = vld [vmem:[#allocation2 + $0x38] sm:$0xff] }
  0xae   :  { %256 = vst [vmem:[#allocation2 + $0x30] sm:$0x70] %v252_v38  ;;  %238 = vst [vmem:[#allocation2 + $0x20] sm:$0x70] %v234_v39  ;;  %v741_v42 = vpack.c.bf16 %v455_v41, %v451_v40  ;;  %v444_v40 = vld [vmem:[%s1130_s1] sm:$0xff]  ;;  %v445_v41 = vld [vmem:[%s1130_s1 + $0x8] sm:$0xff] }
  0xb0   :  { %v323_v43 = vpop.permute.xlu1 %322  ;;  %v321_v44 = vpop.permute.xlu0 %320  ;;  %742 = vmatprep.subr.bf16.mxu1 %v741_v42  ;;  %v446_v42 = vld [vmem:[%s1130_s1 + $0x10] sm:$0xff] }
  0xb1   :  { %v326_v45 = vsel %vm324_vm9, %v321_v44, %v323_v43  ;;  %v448_v50 = vld [vmem:[#allocation2] sm:$0xff]  ;;  %v450_v54 = vld [vmem:[#allocation2 + $0x10] sm:$0xff]  ;;  %v447_v43 = vld [vmem:[%s1130_s1 + $0x18] sm:$0x1] }
  0xb2   :  { %v330_v46 = vsel %vm880_vm1, %v326_v45, 0.0 }
  0xb3   :  { %v334_v47 = vrot.slane %v330_v46, 6 }
  0xb4   :  { %v349_v48 = vpop.permute.xlu1 %348  ;;  %v347_v49 = vpop.permute.xlu0 %346 }
  0xb5   :  { %338 = vst [vmem:[#allocation2 + $0x48] sm:$0x1c] %v334_v47  ;;  %v351_v51 = vsel %vm324_vm9, %v347_v49, %v349_v48  ;;  %v452_v53 = vld [vmem:[#allocation2 + $0x20] sm:$0xff]  ;;  %v454_v55 = vld [vmem:[#allocation2 + $0x30] sm:$0xff] }
  0xb6   :  { %v355_v57 = vsel %vm880_vm1, %v351_v51, 0.0  ;;  %v735_v58 = vpack.c.bf16 %v452_v53, %v448_v50  ;;  %v743_v59 = vpack.c.bf16 %v454_v55, %v450_v54 }
  0xb7   :  { %v359_v60 = vrot.slane %v355_v57, 6 }
  0xb8   :  { %v345_v61 = vpop.permute.xlu1 %344  ;;  %v319_v17 = vpop.permute.xlu0 %318  ;;  %736 = vmatpush1.bf16.msra.mxu0 %v735_v58  ;;  %744 = vmatpush1.bf16.msra.mxu1 %v743_v59 }
  0xb9   :  { %363 = vst [vmem:[#allocation2 + $0x58] sm:$0x1c] %v359_v60  ;;  %v350_v21 = vsel %vm324_vm9, %v345_v61, %v347_v49  ;;  %v325_v62 = vsel %vm324_vm9, %v319_v17, %v321_v44 }
  0xba   :  { %v354_v63 = vsel %vm870_vm0, %v350_v21, 0.0  ;;  %v329_v0 = vsel %vm870_vm0, %v325_v62, 0.0 }
  0xbb   :  { %v358_v30 = vrot.slane %v354_v63, 6  ;;  %v333_v1 = vrot.slane %v329_v0, 6 }
  0xbc   :  { %v415_v2 = vpop.permute.xlu1 %414  ;;  %v413_v3 = vpop.permute.xlu0 %412 }
  0xbd   :  { %362 = vst [vmem:[#allocation2 + $0x50] sm:$0x1c] %v358_v30  ;;  %337 = vst [vmem:[#allocation2 + $0x40] sm:$0x1c] %v333_v1  ;;  %v418_v4 = vsel %vm416_vm10, %v413_v3, %v415_v2 }
  0xbe   :  { %v422_v5 = vsel %vm972_vm3, %v418_v4, 0.0 }
  0xbf   :  { %424 = vst [vmem:[#allocation2 + $0x68] sm:$0x7] %v422_v5 }
  0xc0   :  { %v435_v6 = vpop.permute.xlu1 %434  ;;  %v433_v7 = vpop.permute.xlu0 %432 }
  0xc1   :  { %v437_v8 = vsel %vm416_vm10, %v433_v7, %v435_v6 }
  0xc2   :  { %v441_v27 = vsel %vm972_vm3, %v437_v8, 0.0 }
  0xc3   :  { %443 = vst [vmem:[#allocation2 + $0x78] sm:$0x7] %v441_v27 }
  0xc4   :  { %v377_v9 = vpop.permute.xlu1 %376  ;;  %v375_v10 = vpop.permute.xlu0 %374 }
  0xc5   :  { %v380_v11 = vsel %vm378_vm11, %v375_v10, %v377_v9 }
  0xc6   :  { %384 = vst [vmem:[#allocation2 + $0x48] sm:$0xe0] %v380_v11  ;;  %v461_v23 = vld [vmem:[#allocation2 + $0x68] sm:$0xff] }
  0xc8   :  { %v398_v12 = vpop.permute.xlu1 %397  ;;  %v396_v13 = vpop.permute.xlu0 %395 }
  0xc9   :  { %v400_v14 = vsel %vm378_vm11, %v396_v13, %v398_v12 }
  0xca   :  { %404 = vst [vmem:[#allocation2 + $0x58] sm:$0xe0] %v400_v14  ;;  %v463_v26 = vld [vmem:[#allocation2 + $0x78] sm:$0xff] }
  0xcc   :  { %v431_v15 = vpop.permute.xlu1 %430  ;;  %v411_v16 = vpop.permute.xlu0 %410 }
  0xcd   :  { %v436_v18 = vsel %vm416_vm10, %v431_v15, %v433_v7  ;;  %v417_v19 = vsel %vm416_vm10, %v411_v16, %v413_v3  ;;  %v457_v22 = vld [vmem:[#allocation2 + $0x48] sm:$0xff] }
  0xce   :  { %v440_v24 = vsel %vm996_vm6, %v436_v18, 0.0  ;;  %v421_v25 = vsel %vm996_vm6, %v417_v19, 0.0  ;;  %v737_v28 = vpack.c.bf16 %v461_v23, %v457_v22 }
  0xcf   :  { %442 = vst [vmem:[#allocation2 + $0x70] sm:$0x7] %v440_v24  ;;  %423 = vst [vmem:[#allocation2 + $0x60] sm:$0x7] %v421_v25 }
  0xd0   :  { %v394_v29 = vpop.permute.xlu1 %393  ;;  %v373_v31 = vpop.permute.xlu0 %372  ;;  %738 = vmatprep.subr.bf16.mxu0 %v737_v28 }
  0xd1   :  { %v399_v32 = vsel %vm378_vm11, %v394_v29, %v396_v13  ;;  %v379_v33 = vsel %vm378_vm11, %v373_v31, %v375_v10  ;;  %v459_v20 = vld [vmem:[#allocation2 + $0x58] sm:$0xff] }
  0xd2   :  { %403 = vst [vmem:[#allocation2 + $0x50] sm:$0xe0] %v399_v32  ;;  %383 = vst [vmem:[#allocation2 + $0x40] sm:$0xe0] %v379_v33  ;;  %v745_v34 = vpack.c.bf16 %v463_v26, %v459_v20 }
  0xd4   :  { %746 = vmatprep.subr.bf16.mxu1 %v745_v34 }
  0xd6   :  { %v460_v35 = vld [vmem:[#allocation2 + $0x60] sm:$0xff]  ;;  %v462_v37 = vld [vmem:[#allocation2 + $0x70] sm:$0xff] }
  0xd9   :  { %v456_v36 = vld [vmem:[#allocation2 + $0x40] sm:$0xff]  ;;  %v458_v52 = vld [vmem:[#allocation2 + $0x50] sm:$0xff] }
  0xda   :  { %v739_v38 = vpack.c.bf16 %v460_v35, %v456_v36  ;;  %v747_v39 = vpack.c.bf16 %v462_v37, %v458_v52 }
  0xdc   :  { %740 = vmatpush1.bf16.msra.mxu0 %v739_v38  ;;  %748 = vmatpush1.bf16.msra.mxu1 %v747_v39 }
  0xdf   :  { %717 = vmatmul.mubr.msk.f32.vlgmr.msra.gmra.mrb[0].mxu0 %vm488_vm12, %v444_v40  ;;  %721 = vmatmul.mubr.msk.f32.vlgmr.msra.gmra.mrb[0].mxu1 %vm488_vm12, %v444_v40 }
  0xe0   :  { %571 = vmatprep.mubr.f32.mxu0 %v787_v56  ;;  %660 = vmatprep.mubr.f32.mxu1 %v787_v56 }
  0xe1   :  { %v471_v44 = vpop.permute.xlu0 %470  ;;  %v476_v45 = vpop.permute.xlu1 %475 }
  0xe3   :  { %718 = vmatmul.mubr.msk.f32.gmra.mrb[2].mxu0 %vm488_vm12, %v445_v41  ;;  %722 = vmatmul.mubr.msk.f32.gmra.mrb[2].mxu1 %vm488_vm12, %v445_v41 }
  0xe4   :  { %577 = vmatprep.mubr.f32.mxu0 %v787_v56  ;;  %666 = vmatprep.mubr.f32.mxu1 %v787_v56 }
  0xe5   :  { %v481_v21 = vpop.permute.xlu1 %480  ;;  %v486_v5 = vpop.permute.xlu0 %485 }
  0xe7   :  { %719 = vmatmul.mubr.msk.f32.gmra.mrb[4].mxu0 %vm488_vm12, %v446_v42  ;;  %723 = vmatmul.mubr.msk.f32.gmra.mrb[4].mxu1 %vm488_vm12, %v446_v42 }
  0xe8   :  { %583 = vmatprep.mubr.f32.mxu0 %v787_v56  ;;  %672 = vmatprep.mubr.f32.mxu1 %v787_v56 }
  0xeb   :  { %720 = vmatmul.mubr.msk.f32.gmra.mrb[6].mxu0 %vm488_vm12, %v447_v43  ;;  %724 = vmatmul.mubr.msk.f32.gmra.mrb[6].mxu1 %vm488_vm12, %v447_v43 }
 0x1b2   :  { %v567_v46 = vpop.f32.mrb[0].mxu0  ;;  %v656_v47 = vpop.f32.mrb[0].mxu1 }
 0x1b3   :  { %v568_v48 = vadd.f32 %v567_v46, %v471_v44  ;;  %v657_v49 = vadd.f32 %v656_v47, %v471_v44  ;;  %v569_v50 = vpop.f32.mrb[1].mxu0  ;;  %v658_v51 = vpop.f32.mrb[1].mxu1 }
 0x1b4   :  { %v570_v53 = vadd.f32 %v569_v50, %v471_v44  ;;  %v659_v54 = vadd.f32 %v658_v51, %v471_v44 }
 0x1b5   :  { %679 = vst [vmem:[%s1131_s3] sm:$0xff] %v568_v48  ;;  %725 = vst [vmem:[%s1131_s3 + $0x40] sm:$0xff] %v657_v49 }
 0x1b6   :  { %680 = vst [vmem:[%s1131_s3 + $0x8] sm:$0xff] %v570_v53  ;;  %726 = vst [vmem:[%s1131_s3 + $0x48] sm:$0xff] %v659_v54  ;;  %v573_v56 = vpop.f32.mrb[2].mxu0  ;;  %v662_v55 = vpop.f32.mrb[2].mxu1 }
 0x1b7   :  { %v574_v57 = vadd.f32 %v573_v56, %v476_v45  ;;  %v663_v58 = vadd.f32 %v662_v55, %v476_v45  ;;  %v575_v59 = vpop.f32.mrb[3].mxu0  ;;  %v664_v60 = vpop.f32.mrb[3].mxu1 }
 0x1b8   :  { %v576_v61 = vadd.f32 %v575_v59, %v476_v45  ;;  %v665_v17 = vadd.f32 %v664_v60, %v476_v45 }
 0x1b9   :  { %681 = vst [vmem:[%s1131_s3 + $0x10] sm:$0xff] %v574_v57  ;;  %727 = vst [vmem:[%s1131_s3 + $0x50] sm:$0xff] %v663_v58 }
 0x1ba   :  { %682 = vst [vmem:[%s1131_s3 + $0x18] sm:$0xff] %v576_v61  ;;  %728 = vst [vmem:[%s1131_s3 + $0x58] sm:$0xff] %v665_v17  ;;  %v579_v62 = vpop.f32.mrb[4].mxu0  ;;  %v668_v63 = vpop.f32.mrb[4].mxu1 }
 0x1bb   :  { %v580_v0 = vadd.f32 %v579_v62, %v481_v21  ;;  %v669_v30 = vadd.f32 %v668_v63, %v481_v21  ;;  %v581_v1 = vpop.f32.mrb[5].mxu0  ;;  %v670_v2 = vpop.f32.mrb[5].mxu1 }
 0x1bc   :  { %v582_v3 = vadd.f32 %v581_v1, %v481_v21  ;;  %v671_v4 = vadd.f32 %v670_v2, %v481_v21 }
 0x1bd   :  { %683 = vst [vmem:[%s1131_s3 + $0x20] sm:$0xff] %v580_v0  ;;  %729 = vst [vmem:[%s1131_s3 + $0x60] sm:$0xff] %v669_v30 }
 0x1be   :  { %684 = vst [vmem:[%s1131_s3 + $0x28] sm:$0xff] %v582_v3  ;;  %730 = vst [vmem:[%s1131_s3 + $0x68] sm:$0xff] %v671_v4  ;;  %v585_v6 = vpop.f32.mrb[6].mxu0  ;;  %v674_v7 = vpop.f32.mrb[6].mxu1 }
 0x1bf   :  { %v586_v8 = vadd.f32 %v585_v6, %v486_v5  ;;  %v675_v27 = vadd.f32 %v674_v7, %v486_v5  ;;  %v587_v9 = vpop.f32.mrb[7].mxu0  ;;  %v676_v10 = vpop.f32.mrb[7].mxu1 }
 0x1c0   :  { %v588_v11 = vadd.f32 %v587_v9, %v486_v5  ;;  %v677_v12 = vadd.f32 %v676_v10, %v486_v5 }
 0x1c1   :  { %685 = vst [vmem:[%s1131_s3 + $0x30] sm:$0x1] %v586_v8  ;;  %731 = vst [vmem:[%s1131_s3 + $0x70] sm:$0x1] %v675_v27 }
 0x1c2   :  { %686 = vst [vmem:[%s1131_s3 + $0x38] sm:$0x1] %v588_v11  ;;  %732 = vst [vmem:[%s1131_s3 + $0x78] sm:$0x1] %v677_v12 }

</bundles_post_ra>
